<compile_context>
chip_gen: v7x
topology: tpu7x:2x2x1
jax: 0.10.0
libtpu: 0.0.40
codegen_flags: <defaults>
</compile_context>

<pallas_src>
import jax
import jax.numpy as jnp
import numpy as np
from jax.experimental import pallas as pl
from jax.experimental.pallas import tpu as pltpu

_LANES = 128       # lane-dense last dim (full vreg lane width, unmasked stores)
_ROW_ALIGN = 32    # legal sublane tiling for f32 (8), bf16 (16), int8/fp8 (32)
_MAX_TM = 1024     # ~512 KiB per f32 block; 2x(in+out) double-buffered ~2 MiB VMEM


def _identity_copy_kernel(x_ref, o_ref):
    # Pure streaming copy: one full-tile vector load + store, nothing else.
    o_ref[...] = x_ref[...]


def identity_pooling(x):
    """IdentityPooling_.forward: returns (x, None, None).

    The tensor is routed through a Pallas streaming-copy kernel (identity);
    the two index outputs of the PyTorch module are plain Nones.
    """
    orig_shape = x.shape
    n = x.size

    # Flat, lane-dense 2D view [rows_pad, 128].
    rows = pl.cdiv(n, _LANES)
    tm = min(_MAX_TM, pl.cdiv(rows, _ROW_ALIGN) * _ROW_ALIGN)
    rows_pad = pl.cdiv(rows, tm) * tm
    total_pad = rows_pad * _LANES

    flat = x.reshape(-1)
    if total_pad != n:
        flat = jnp.pad(flat, (0, total_pad - n))
    x2d = flat.reshape(rows_pad, _LANES)

    out2d = pl.pallas_call(
        _identity_copy_kernel,
        out_shape=jax.ShapeDtypeStruct((rows_pad, _LANES), x.dtype),
        grid_spec=pltpu.PrefetchScalarGridSpec(
            num_scalar_prefetch=0,
            grid=(rows_pad // tm,),
            in_specs=[pl.BlockSpec((tm, _LANES), lambda i: (i, 0))],
            out_specs=pl.BlockSpec((tm, _LANES), lambda i: (i, 0)),
        ),
        compiler_params=pltpu.CompilerParams(
            dimension_semantics=("parallel",),
        ),
    )(x2d)

    out = out2d.reshape(-1)[:n].reshape(orig_shape)
    # TODO(synk): the PyTorch module returns literal None placeholders for the
    # pooling indices; there is nothing to compute for them in a kernel.
    return out, None, None


if __name__ == "__main__":
    key = jax.random.PRNGKey(0)
    # Small shapes consistent with the module's [B, Fin, V, X, Y, Z] layout:
    B, Fin, V, X, Y, Z = 2, 4, 12, 2, 2, 2
    x = jax.random.normal(key, (B, Fin, V, X, Y, Z), dtype=jnp.float32)

    out, idx_spa, idx_sph = jax.jit(identity_pooling)(x)
    out = jax.block_until_ready(out)

    assert idx_spa is None and idx_sph is None
    assert out.shape == x.shape, out.shape
    assert out.dtype == x.dtype
    np.testing.assert_array_equal(np.asarray(out), np.asarray(x))

    print("KERNEL_OK")
</pallas_src>

<mosaic_0001>
module attributes {stable_mosaic.version = 11 : i64} {
  func.func @_identity_copy_kernel(%arg0: i32, %arg1: memref<32x128xf32, #tpu.memory_space<vmem>>, %arg2: memref<32x128xf32, #tpu.memory_space<vmem>>) attributes {dimension_semantics = [#tpu.dimension_semantics<parallel>], iteration_bounds = array<i64: 1>, scalar_prefetch = 0 : i64, scratch_operands = 0 : i64, tpu.core_type = #tpu.core_type<tc>, window_params = [{transform_indices = @transform_0, window_bounds = array<i64: 32, 128>}, {transform_indices = @transform_1, window_bounds = array<i64: 32, 128>}]} {
    %c0 = arith.constant 0 : index
    %c0_0 = arith.constant 0 : index
    %0 = vector.load %arg1[%c0, %c0_0] : memref<32x128xf32, #tpu.memory_space<vmem>>, vector<32x128xf32>
    %c0_1 = arith.constant 0 : index
    %c0_2 = arith.constant 0 : index
    %1 = vector.load %arg2[%c0_1, %c0_2] : memref<32x128xf32, #tpu.memory_space<vmem>>, vector<32x128xf32>
    tpu.vector_store %arg2[%c0_1, %c0_2], %0 {strides = array<i32>} : memref<32x128xf32, #tpu.memory_space<vmem>>, vector<32x128xf32>,
    return
  }
  func.func @transform_0(%arg0: i32) -> (i32, i32) {
    %c0_i32 = arith.constant 0 : i32
    %c0_i32_0 = arith.constant 0 : i32
    return %arg0, %c0_i32 : i32, i32
  }
  func.func @transform_1(%arg0: i32) -> (i32, i32) {
    %c0_i32 = arith.constant 0 : i32
    %c0_i32_0 = arith.constant 0 : i32
    return %arg0, %c0_i32 : i32, i32
  }
}

</mosaic_0001>

<bundles_post_ra>
// kernel: identity_pooling.1
= control target key start
LH: loop header
LB: loop body
LE: loop exit
PB: predicated region body
PF: predicated region fallthrough
CT: control target
= control target key end

     0   :  { %s54_s0 = inlined_call_operand.vmem [shape: f32[32,128], index: 0, kind: input, shape index: {}]   ;;  %s55_s1 = inlined_call_operand.vmem [shape: f32[32,128], index: 1, kind: output, shape index: {}]  }
   0x1   :  { %v8_v0 = vld [vmem:[%s54_s0] sm:$0xff]  ;;  %v9_v1 = vld [vmem:[%s54_s0 + $0x8] sm:$0xff]  ;;  %v10_v2 = vld [vmem:[%s54_s0 + $0x10] sm:$0xff] }
   0x2   :  { %12 = vst [vmem:[%s55_s1] sm:$0xff] %v8_v0  ;;  %13 = vst [vmem:[%s55_s1 + $0x8] sm:$0xff] %v9_v1  ;;  %v11_v3 = vld [vmem:[%s54_s0 + $0x18] sm:$0xff] }
   0x3   :  { %14 = vst [vmem:[%s55_s1 + $0x10] sm:$0xff] %v10_v2  ;;  %15 = vst [vmem:[%s55_s1 + $0x18] sm:$0xff] %v11_v3 }

</bundles_post_ra>
